<compile_context>
chip_gen: v7x
topology: tpu7x:2x2x1
jax: 0.10.0
libtpu: 0.0.40
codegen_flags: <defaults>
</compile_context>

<pallas_src>
import functools

import jax
import jax.numpy as jnp
from jax.experimental import pallas as pl
from jax.experimental.pallas import tpu as pltpu

LANE = 128
SUBLANE = 8


def _round_up(n: int, m: int) -> int:
    return ((n + m - 1) // m) * m


def mlp_kernel(x_ref, w1_ref, b1_ref, w2row_ref, b2_ref, o_ref):
    """One batch tile of: relu(x @ W1 + b1) . w2 + b2.

    x_ref:     (TB, IN)       f32 VMEM (unpadded feature dim)
    w1_ref:    (IN, HID_PAD)  f32 VMEM (resident across batch tiles)
    b1_ref:    (1, HID_PAD)   f32 VMEM
    w2row_ref: (1, HID_PAD)   f32 VMEM (W2 column stored as a row)
    b2_ref:    (1,)           f32 SMEM (scalar bias)
    o_ref:     (TB, 1)        f32 VMEM -> (B, 1) HBM (4 B/row writeback)
    """
    # Layer 1 on the MXU (f32 accumulation; Mosaic pads K=IN into the tile),
    # bias + ReLU on the VPU.
    h = jnp.dot(x_ref[...], w1_ref[...], preferred_element_type=jnp.float32)
    h = jnp.maximum(h + b1_ref[...], 0.0)
    # Layer 2 (output_size == 1): VPU multiply + XLU lane reduction instead of
    # an N=1 MXU matmul; scalar bias read from SMEM.
    y = jnp.sum(h * w2row_ref[...], axis=-1, keepdims=True) + b2_ref[0]
    o_ref[...] = y.astype(o_ref.dtype)


def init_params(key, input_size=10, hidden_size=20, output_size=1):
    """Deterministic init mimicking nn.Linear's U(-1/sqrt(fan_in), 1/sqrt(fan_in)).

    Weights are stored pre-transposed: (in_features, out_features).
    """
    k1, k2, k3, k4 = jax.random.split(key, 4)
    bound1 = 1.0 / jnp.sqrt(input_size)
    bound2 = 1.0 / jnp.sqrt(hidden_size)
    w1_t = jax.random.uniform(k1, (input_size, hidden_size), jnp.float32, -bound1, bound1)
    b1 = jax.random.uniform(k2, (1, hidden_size), jnp.float32, -bound1, bound1)
    w2_t = jax.random.uniform(k3, (hidden_size, output_size), jnp.float32, -bound2, bound2)
    b2 = jax.random.uniform(k4, (1, output_size), jnp.float32, -bound2, bound2)
    return w1_t, b1, w2_t, b2


def pad_params(w1_t, b1, w2_t, b2):
    """Zero-pad only the *hidden* (lane) axis of the tiny weights, once, offline.

    x's feature dim is intentionally left unpadded (dominant HBM stream).
    """
    in_dim, hid = w1_t.shape
    hid2, out_dim = w2_t.shape
    assert hid == hid2
    assert out_dim == 1, "kernel specialized for output_size == 1"
    # TODO(synk): for output_size > 1, use a padded second MXU matmul instead
    # of the VPU row-reduce path.
    hid_pad = _round_up(hid, LANE)
    w1_p = jnp.pad(w1_t, ((0, 0), (0, hid_pad - hid)))
    b1_p = jnp.pad(b1.reshape(1, hid), ((0, 0), (0, hid_pad - hid)))
    w2_row = jnp.pad(w2_t.reshape(1, hid), ((0, 0), (0, hid_pad - hid)))
    b2_s = b2.reshape(1).astype(jnp.float32)
    return w1_p, b1_p, w2_row, b2_s


@functools.partial(jax.jit, static_argnames=("out_dim", "tile_b"))
def simple_model_forward(x, w1_p, b1_p, w2_row, b2_s, *, out_dim=1, tile_b=1024):
    """x: (B, input_size); padded params from pad_params. Returns (B, out_dim)."""
    B, in_dim = x.shape
    in_dim_w, hid_pad = w1_p.shape
    assert in_dim == in_dim_w, "x feature dim must match W1"

    # Batch tile: large (amortizes per-step overhead) but capped near B/2 so a
    # big batch always yields >= 2 "parallel" grid steps (keeps both v7x TCs busy).
    tb = min(tile_b, max(SUBLANE, _round_up(pl.cdiv(B, 2), SUBLANE)))
    grid_b = pl.cdiv(B, tb)  # ragged last tile handled by Pallas (no batch pad)

    out = pl.pallas_call(
        mlp_kernel,
        out_shape=jax.ShapeDtypeStruct((B, out_dim), x.dtype),
        grid=(grid_b,),
        in_specs=[
            pl.BlockSpec((tb, in_dim), lambda i: (i, 0)),         # x tile (unpadded)
            pl.BlockSpec((in_dim, hid_pad), lambda i: (0, 0)),    # W1 (resident)
            pl.BlockSpec((1, hid_pad), lambda i: (0, 0)),         # b1 (resident)
            pl.BlockSpec((1, hid_pad), lambda i: (0, 0)),         # W2 row (resident)
            pl.BlockSpec(memory_space=pltpu.MemorySpace.SMEM),    # b2 scalar
        ],
        out_specs=pl.BlockSpec((tb, out_dim), lambda i: (i, 0)),
        compiler_params=pltpu.CompilerParams(
            dimension_semantics=("parallel",)),
    )(x, w1_p, b1_p, w2_row, b2_s)

    return out


if __name__ == "__main__":
    key = jax.random.PRNGKey(0)
    k_x, k_p, k_x2, k_x3 = jax.random.split(key, 4)

    batch, input_size, hidden_size, output_size = 8, 10, 20, 1
    x = jax.random.normal(k_x, (batch, input_size), jnp.float32)
    w1_t, b1, w2_t, b2 = init_params(k_p, input_size, hidden_size, output_size)
    params = pad_params(w1_t, b1, w2_t, b2)

    out = jax.block_until_ready(simple_model_forward(x, *params))
    ref = jnp.maximum(x @ w1_t + b1, 0.0) @ w2_t + b2
    assert out.shape == (batch, output_size)
    assert jnp.allclose(out, ref, atol=1e-5, rtol=1e-5)

    # Exercise the multi-step (2 grid steps, tile-divisible) path.
    x_big = jax.random.normal(k_x2, (1024, input_size), jnp.float32)
    out_big = jax.block_until_ready(simple_model_forward(x_big, *params))
    ref_big = jnp.maximum(x_big @ w1_t + b1, 0.0) @ w2_t + b2
    assert out_big.shape == (1024, output_size)
    assert jnp.allclose(out_big, ref_big, atol=1e-5, rtol=1e-5)

    # Exercise the ragged-tail path (B not a multiple of the tile; no batch pad).
    x_rag = jax.random.normal(k_x3, (1000, input_size), jnp.float32)
    out_rag = jax.block_until_ready(simple_model_forward(x_rag, *params))
    ref_rag = jnp.maximum(x_rag @ w1_t + b1, 0.0) @ w2_t + b2
    assert out_rag.shape == (1000, output_size)
    assert jnp.allclose(out_rag, ref_rag, atol=1e-5, rtol=1e-5)

    print("KERNEL_OK")
</pallas_src>

<mosaic_0001>
module attributes {stable_mosaic.version = 11 : i64} {
  func.func @mlp_kernel(%arg0: i32, %arg1: memref<8x10xf32, #tpu.memory_space<vmem>>, %arg2: memref<10x128xf32, #tpu.memory_space<vmem>>, %arg3: memref<1x128xf32, #tpu.memory_space<vmem>>, %arg4: memref<1x128xf32, #tpu.memory_space<vmem>>, %arg5: memref<1xf32, #tpu.memory_space<smem>>, %arg6: memref<8x1xf32, #tpu.memory_space<vmem>>) attributes {dimension_semantics = [#tpu.dimension_semantics<parallel>], iteration_bounds = array<i64: 1>, scalar_prefetch = 0 : i64, scratch_operands = 0 : i64, tpu.core_type = #tpu.core_type<tc>, window_params = [{transform_indices = @transform_0, window_bounds = array<i64: 8, 10>}, {pipeline_mode = #tpu.pipeline_mode<synchronous>, transform_indices = @transform_1, window_bounds = array<i64: 10, 128>}, {pipeline_mode = #tpu.pipeline_mode<synchronous>, transform_indices = @transform_2, window_bounds = array<i64: 1, 128>}, {pipeline_mode = #tpu.pipeline_mode<synchronous>, transform_indices = @transform_3, window_bounds = array<i64: 1, 128>}, {transform_indices = @transform_4, window_bounds = array<i64: 1>}, {transform_indices = @transform_5, window_bounds = array<i64: 8, 1>}]} {
    %c0 = arith.constant 0 : index
    %c0_0 = arith.constant 0 : index
    %0 = vector.load %arg1[%c0, %c0_0] : memref<8x10xf32, #tpu.memory_space<vmem>>, vector<8x10xf32>
    %c0_1 = arith.constant 0 : index
    %c0_2 = arith.constant 0 : index
    %1 = vector.load %arg2[%c0_1, %c0_2] : memref<10x128xf32, #tpu.memory_space<vmem>>, vector<10x128xf32>
    %cst = arith.constant dense<0.000000e+00> : vector<8x128xf32>
    %2 = tpu.matmul %0, %1, %cst {dimension_numbers = #tpu.dot_dimension_numbers<[1], [0], [0], [1], [0, 0, 1, 1], [], []>} : vector<8x10xf32>, vector<10x128xf32>, vector<8x128xf32> -> vector<8x128xf32>
    %c0_3 = arith.constant 0 : index
    %c0_4 = arith.constant 0 : index
    %3 = vector.load %arg3[%c0_3, %c0_4] : memref<1x128xf32, #tpu.memory_space<vmem>>, vector<1x128xf32>
    %4 = vector.broadcast %3 : vector<1x128xf32> to vector<8x128xf32>
    %5 = arith.addf %2, %4 : vector<8x128xf32>
    %cst_5 = arith.constant 0.000000e+00 : f32
    %6 = vector.broadcast %cst_5 : f32 to vector<8x128xf32>
    %7 = arith.maximumf %5, %6 : vector<8x128xf32>
    %c0_6 = arith.constant 0 : index
    %c0_7 = arith.constant 0 : index
    %8 = vector.load %arg4[%c0_6, %c0_7] : memref<1x128xf32, #tpu.memory_space<vmem>>, vector<1x128xf32>
    %9 = vector.broadcast %8 : vector<1x128xf32> to vector<8x128xf32>
    %10 = arith.mulf %7, %9 : vector<8x128xf32>
    %cst_8 = arith.constant dense<0.000000e+00> : vector<8xf32>
    %11 = vector.multi_reduction <add>, %10, %cst_8 [1] : vector<8x128xf32> to vector<8xf32>
    %12 = vector.shape_cast %11 : vector<8xf32> to vector<8x1xf32>
    %c0_9 = arith.constant 0 : index
    %13 = memref.load %arg5[%c0_9] : memref<1xf32, #tpu.memory_space<smem>>
    %14 = vector.broadcast %13 : f32 to vector<8x1xf32>
    %15 = arith.addf %12, %14 : vector<8x1xf32>
    %c0_10 = arith.constant 0 : index
    %c0_11 = arith.constant 0 : index
    %16 = vector.load %arg6[%c0_10, %c0_11] : memref<8x1xf32, #tpu.memory_space<vmem>>, vector<8x1xf32>
    tpu.vector_store %arg6[%c0_10, %c0_11], %15 {strides = array<i32>} : memref<8x1xf32, #tpu.memory_space<vmem>>, vector<8x1xf32>,
    return
  }
  func.func @transform_0(%arg0: i32) -> (i32, i32) {
    %c0_i32 = arith.constant 0 : i32
    %c0_i32_0 = arith.constant 0 : i32
    return %arg0, %c0_i32 : i32, i32
  }
  func.func @transform_1(%arg0: i32) -> (i32, i32) {
    %c0_i32 = arith.constant 0 : i32
    %c0_i32_0 = arith.constant 0 : i32
    %c0_i32_1 = arith.constant 0 : i32
    return %c0_i32, %c0_i32_0 : i32, i32
  }
  func.func @transform_2(%arg0: i32) -> (i32, i32) {
    %c0_i32 = arith.constant 0 : i32
    %c0_i32_0 = arith.constant 0 : i32
    %c0_i32_1 = arith.constant 0 : i32
    return %c0_i32, %c0_i32_0 : i32, i32
  }
  func.func @transform_3(%arg0: i32) -> (i32, i32) {
    %c0_i32 = arith.constant 0 : i32
    %c0_i32_0 = arith.constant 0 : i32
    %c0_i32_1 = arith.constant 0 : i32
    return %c0_i32, %c0_i32_0 : i32, i32
  }
  func.func @transform_4(%arg0: i32) -> i32 {
    %c0_i32 = arith.constant 0 : i32
    %c0_i32_0 = arith.constant 0 : i32
    return %c0_i32 : i32
  }
  func.func @transform_5(%arg0: i32) -> (i32, i32) {
    %c0_i32 = arith.constant 0 : i32
    %c0_i32_0 = arith.constant 0 : i32
    return %arg0, %c0_i32 : i32, i32
  }
}

</mosaic_0001>

<bundles_post_ra>
// kernel: simple_model_forward.1
= control target key start
LH: loop header
LB: loop body
LE: loop exit
PB: predicated region body
PF: predicated region fallthrough
CT: control target
= control target key end

     0   :  { %11 = vsyncpa [#allocation4], 0  ;;  %s312_s0 = inlined_call_operand.hbm [shape: f32[8,10], index: 0, kind: input, shape index: {}]   ;;  %s313_s1 = inlined_call_operand.hbm [shape: f32[10,128], index: 1, kind: input, shape index: {}]   ;;  %s314_s2 = inlined_call_operand.vmem [shape: f32[1,128], index: 2, kind: input, shape index: {}]   ;;  %s315_s3 = inlined_call_operand.vmem [shape: f32[1,128], index: 3, kind: input, shape index: {}]   ;;  %s316_s4 = inlined_call_operand.<no memory space> [shape: f32[1], index: 4, kind: input, shape index: {}]   ;;  %s317_s5 = inlined_call_operand.vmem [shape: f32[8,1], index: 5, kind: output, shape index: {}]  }
   0x1   :  { %12 = vsyncpa [#allocation6], 0  ;;  %s231_s18 = smov [#allocation3]   ;;  %s232_s20 = smov [#allocation5]  }
   0x2   :  { %s19_s19 = sshll.u32 %s231_s18, 4  ;;  %s28_s21 = sshll.u32 %s232_s20, 4  ;;  %s20_s19 = int_to_ptr.vmem [resolvable:$true] %s19_s19  ;;  %s269_s21 = int_to_ptr.vmem [resolvable:$true] %s28_s21 }
   0x3   :  { %s183_s24 = scalar_lea.hbm %s312_s0, 128 }
   0x4   :  { %p184_p0 = scmp.ne.s32.totalorder %s312_s0, %s183_s24  ;;  %p187_p1 = scmp.lt.u32.totalorder %s183_s24, %s312_s0 }
   0x6   :  { %p189_p2 = pnand %p187_p1, %p184_p0 }
   0x8   :  { %192 = shalt.err (!%p189_p2)
}
   0x9   :  { %s193_s29 = scalar_lea.vmem %s20_s19, 128  ;;  %p198_p4 = scmp.lt.s32.totalorder %s20_s19, %s20_s19 }
   0xa   :  { %p194_p3 = scmp.ne.s32.totalorder %s20_s19, %s193_s29  ;;  %p199_p5 = scmp.lt.s32.totalorder %s193_s29, %s193_s29 }
   0xc   :  { %p200_p6 = por %p199_p5, %p198_p4 }
   0xe   :  { %p201_p7 = pnand %p200_p6, %p194_p3 }
  0x10   :  { %204 = shalt.err (!%p201_p7)
}
  0x11   :  { %22 = dma.hbm_to_vmem [thread:$0]  %s312_s0, 128, %s20_s19, [#allocation4]  }
  0x12   :  { %s205_s9 = scalar_lea.hbm %s313_s1, 256 }
  0x13   :  { %p206_p8 = scmp.ne.s32.totalorder %s313_s1, %s205_s9  ;;  %p209_p9 = scmp.lt.u32.totalorder %s205_s9, %s313_s1 }
  0x15   :  { %p211_p10 = pnand %p209_p9, %p206_p8 }
  0x17   :  { %214 = shalt.err (!%p211_p10)
}
  0x18   :  { %s215_s14 = scalar_lea.vmem %s269_s21, 256  ;;  %p220_p12 = scmp.lt.s32.totalorder %s269_s21, %s269_s21 }
  0x19   :  { %p216_p11 = scmp.ne.s32.totalorder %s269_s21, %s215_s14  ;;  %p221_p13 = scmp.lt.s32.totalorder %s215_s14, %s215_s14 }
  0x1b   :  { %p222_p0 = por %p221_p13, %p220_p12 }
  0x1d   :  { %p223_p1 = pnand %p222_p0, %p216_p11 }
  0x1f   :  { %226 = shalt.err (!%p223_p1)
}
  0x20   :  { %s233_s0 = smov 128   ;;  %s234_s15 = smov 8  }
  0x21   :  { %34 = dma.hbm_to_vmem [thread:$0]  %s313_s1, 256, %s269_s21, [#allocation6], %s233_s0, %s233_s0, %s234_s15  }
  0x22   :  { %227 = dma.done.wait [#allocation4], 128  }
  0x23   :  { %228 = vsyncadd [#allocation4], 4294967168 }
  0x24   :  { %229 = dma.done.wait [#allocation6], 256  }
  0x25   :  { %230 = vsyncadd [#allocation6], 4294967040  ;;  %v235_v0 = vmov 0.0|0.0   ;;  %vm236_vm0 = vmmov 0   ;;  %v237_v1 = vmov 0.0   ;;  %vm61_vm1 = vcmask 1041408  }
  0x26   :  { %171 = vmatprep.subr.bf16.mxu0 %v235_v0  ;;  %168 = vmatprep.mubr.msk.f32.mxu0 %vm236_vm0, %v237_v1  ;;  %v48_v2 = vld [vmem:[#allocation5] sm:$0xff]  ;;  %v49_v3 = vld [vmem:[#allocation5 + $0x8] sm:$0x3]  ;;  %vm238_vm2 = vmmov 1   ;;  %v47_v5 = vld [vmem:[#allocation3] sm:$0xff]  ;;  %vm57_vm4 = vcmask 80896   ;;  %v147_v13 = vstv %s316_s4 }
  0x27   :  { %vm173_vm3 = vmpackc.low %vm61_vm1, %vm238_vm2  ;;  %v172_v4 = vpack.c.bf16 %v49_v3, %v48_v2  ;;  %v157_v6 = vld [vmem:[%s314_s2] ss:$0 sm:$0xff]  ;;  %vm149_vm5 = vcmask 7168  }
  0x28   :  { %v160_v10 = vld [vmem:[%s315_s3] ss:$0 sm:$0xff] }
  0x29   :  { %174 = vmatpush3.bf16.msk.msra.mxu0 %vm173_vm3, %v172_v4 }
  0x2c   :  { %169 = vmatmul.mubr.msk.f32.vlgmr.msra.gmra.mrb[0].mxu0 %vm57_vm4, %v47_v5 }
  0xff   :  { %v131_v7 = vpop.f32.mrb[0].mxu0 }
 0x100   :  { %v132_v8 = vadd.f32 %v157_v6, %v131_v7  ;;  %v170_v9 = vpop.f32.mrb[1].mxu0 }
 0x102   :  { %v135_v11 = vmax.f32 %v132_v8, 0.0 }
 0x104   :  { %v143_v12 = vmul.f32 %v160_v10, %v135_v11 }
 0x106   :  { %144 = vadd.xlane.f32.xlu0 %v143_v12 }
 0x193   :  { %v145_v14 = vpop.xlane.xlu0 %144 }
 0x194   :  { %v148_v15 = vadd.f32 %v147_v13, %v145_v14 }
 0x196   :  { %150 = vst.msk [vmem:[%s317_s5] sm:$0xff] %vm149_vm5, %v148_v15 }
 0x197   :  { %155 = vsyncpa [#allocation4], 1 }
 0x198   :  { %156 = vsyncpa [#allocation6], 1 }

</bundles_post_ra>
